<compile_context>
chip_gen: v7x
topology: tpu7x:2x2x1
jax: 0.10.0
libtpu: 0.0.40
codegen_flags: <defaults>
</compile_context>

<pallas_src>
import functools

import jax
import jax.numpy as jnp
from jax import lax
from jax.experimental import pallas as pl
from jax.experimental.pallas import tpu as pltpu

IN_DIM = 5    # input features (fixed by the module)
OUT_DIM = 4   # output features (fixed by the module)


def _round_up(x, m):
    return ((x + m - 1) // m) * m


def _pick_tile_b(batch, max_tile):
    """Batch-tile heuristic: as large as possible (amortize per-grid-step
    overhead), capped at max_tile, and for big batches keep >= 2 grid steps so
    the ("parallel",) axis shards across v7x's two TensorCores."""
    if batch <= max_tile:
        return _round_up(max(batch, 1), 256)
    half = _round_up(pl.cdiv(batch, 2), 256)
    return min(max_tile, half)


def _fitter_kernel(x_ref, w1_ref, b1_ref, ws_ref, bs_ref, wl_ref, bl_ref, o_ref,
                   *, matmul_dtype):
    """Whole MLP forward for one batch tile, fully inside VMEM.

    x_ref  : (TB, IN_DIM)  row-major batch tile (contiguous HBM DMA)
    w1_ref : (H, IN_DIM)   b1_ref : (H, 1)
    ws_ref : (L, H, H)     bs_ref : (L, H, 1)
    wl_ref : (OUT_DIM, H)  bl_ref : (OUT_DIM, 1)
    o_ref  : (OUT_DIM, TB) feature-major, batch on the 128-lane axis
    """
    cdt = matmul_dtype

    # fc1: contract the shared IN_DIM axis of w1 (H, IN) and x (TB, IN),
    # giving (H, TB) feature-major directly (no transpose of x needed).
    h = jnp.tanh(
        lax.dot_general(
            w1_ref[...].astype(cdt), x_ref[...].astype(cdt),
            dimension_numbers=(((1,), (1,)), ((), ())),
            preferred_element_type=jnp.float32,
        )
        + b1_ref[...]
    )

    def layer(w, b, hh):
        # (H, H) @ (H, TB) -> (H, TB); bias broadcasts along lanes.
        return jnp.tanh(
            jnp.dot(w.astype(cdt), hh.astype(cdt),
                    preferred_element_type=jnp.float32) + b)

    num_hidden_layers = ws_ref.shape[0]  # static
    if num_hidden_layers <= 8:
        for i in range(num_hidden_layers):
            h = layer(ws_ref[i], bs_ref[i], h)
    else:
        # Deep stacks: bound live ranges instead of fully unrolling.
        h = lax.fori_loop(0, num_hidden_layers,
                          lambda i, hh: layer(ws_ref[i], bs_ref[i], hh), h)

    # fcLast (no activation): (OUT_DIM, H) @ (H, TB) -> (OUT_DIM, TB).
    o_ref[...] = (
        jnp.dot(wl_ref[...].astype(cdt), h.astype(cdt),
                preferred_element_type=jnp.float32)
        + bl_ref[...]
    ).astype(o_ref.dtype)


def fitter_forward(x, params, *, tile_b=None, max_tile=4096,
                   matmul_dtype=jnp.float32):
    """x: (B, IN_DIM) float32. params: dict of weights (see init_params).

    tile_b: batch tile (lane axis inside the kernel). If None, chosen
    automatically (multiple of 256, capped at max_tile, >= 2 grid steps for
    large batches). matmul_dtype=jnp.bfloat16 halves MXU issue pressure on
    v6e/v7x (bias-add/tanh stay f32); keep f32 on v5e unless MXU-bound.
    """
    w1, b1, ws, bs, wl, bl = (
        params["w1"], params["b1"], params["ws"], params["bs"],
        params["wl"], params["bl"],
    )
    B = x.shape[0]
    H = w1.shape[0]
    L = ws.shape[0]

    if tile_b is None:
        tile_b = _pick_tile_b(B, max_tile)
    assert tile_b % 128 == 0, "tile_b must be a multiple of 128 (lane width)"

    # Pad the batch (row-major, contiguous) only when it is not tile-aligned.
    B_pad = _round_up(B, tile_b)
    x_p = x if B_pad == B else jnp.pad(x, ((0, B_pad - B), (0, 0)))

    param_bytes = sum(int(p.size) * p.dtype.itemsize
                      for p in (w1, b1, ws, bs, wl, bl))
    cost = pl.CostEstimate(
        flops=2 * B_pad * (IN_DIM * H + L * H * H + H * OUT_DIM),
        transcendentals=(L + 1) * H * B_pad,
        bytes_accessed=B_pad * 4 * (IN_DIM + OUT_DIM) + param_bytes,
    )

    grid = (B_pad // tile_b,)
    out_t = pl.pallas_call(
        functools.partial(_fitter_kernel, matmul_dtype=matmul_dtype),
        out_shape=jax.ShapeDtypeStruct((OUT_DIM, B_pad), x.dtype),
        grid=grid,
        in_specs=[
            pl.BlockSpec((tile_b, IN_DIM), lambda i: (i, 0)),   # x: row-major batch tile
            pl.BlockSpec((H, IN_DIM), lambda i: (0, 0)),        # w1 (VMEM-resident)
            pl.BlockSpec((H, 1), lambda i: (0, 0)),             # b1
            pl.BlockSpec((L, H, H), lambda i: (0, 0, 0)),       # stacked hidden weights
            pl.BlockSpec((L, H, 1), lambda i: (0, 0, 0)),       # stacked hidden biases
            pl.BlockSpec((OUT_DIM, H), lambda i: (0, 0)),       # wLast
            pl.BlockSpec((OUT_DIM, 1), lambda i: (0, 0)),       # bLast
        ],
        out_specs=pl.BlockSpec((OUT_DIM, tile_b), lambda i: (0, i)),  # lane-dense
        compiler_params=pltpu.CompilerParams(
            dimension_semantics=("parallel",)),
        cost_estimate=cost,
    )(x_p, w1, b1, ws, bs, wl, bl)

    # Back to the module's row-major (B, OUT_DIM) view; drop the padding.
    return out_t[:, :B].T


def init_params(key, num_hidden_nodes, num_hidden_layers):
    """Synthetic init mimicking PyTorch Linear's U(-1/sqrt(fan_in), +).

    Weights are stored PyTorch-style as (out_features, in_features).
    """
    ks = jax.random.split(key, 6)
    H, L = num_hidden_nodes, num_hidden_layers

    def u(k, shape, fan_in):
        bound = 1.0 / jnp.sqrt(jnp.float32(fan_in))
        return jax.random.uniform(k, shape, jnp.float32, -bound, bound)

    return {
        "w1": u(ks[0], (H, IN_DIM), IN_DIM),
        "b1": u(ks[1], (H, 1), IN_DIM),
        "ws": u(ks[2], (L, H, H), H),
        "bs": u(ks[3], (L, H, 1), H),
        "wl": u(ks[4], (OUT_DIM, H), H),
        "bl": u(ks[5], (OUT_DIM, 1), H),
    }


def _linear_ref(h, w, b):
    # Exact-f32 linear layer (broadcast multiply + sum on the VPU). Avoids the
    # TPU default matmul-precision ambiguity so the reference is a clean
    # ground truth regardless of how dots are lowered.
    return jnp.sum(h[:, None, :] * w[None, :, :], axis=-1) + b


def fitter_reference(x, params):
    """Pure-JAX reference (same math as the PyTorch module, row-major)."""
    h = jnp.tanh(_linear_ref(x, params["w1"], params["b1"][:, 0]))
    for i in range(params["ws"].shape[0]):
        h = jnp.tanh(_linear_ref(h, params["ws"][i], params["bs"][i][:, 0]))
    return _linear_ref(h, params["wl"], params["bl"][:, 0])


if __name__ == "__main__":
    key = jax.random.PRNGKey(0)
    k_param, k_x, k_x2 = jax.random.split(key, 3)

    num_hidden_nodes = 32
    num_hidden_layers = 2

    params = init_params(k_param, num_hidden_nodes, num_hidden_layers)

    # Small demo batch: auto tile (256), single grid step.
    x_small = jax.random.normal(k_x, (8, IN_DIM), jnp.float32)
    out = jax.block_until_ready(fitter_forward(x_small, params))
    ref = fitter_reference(x_small, params)
    assert out.shape == (8, OUT_DIM)
    # Tolerance accounts for possible reduced-precision (bf16-pass) lowering of
    # f32 dots on TPU; structural bugs would show errors orders of magnitude larger.
    assert jnp.allclose(out, ref, atol=2e-2, rtol=2e-2)

    # Ragged batch exercising padding and a multi-step ("parallel") grid.
    x_big = jax.random.normal(k_x2, (300, IN_DIM), jnp.float32)
    out_big = jax.block_until_ready(fitter_forward(x_big, params, tile_b=256))
    ref_big = fitter_reference(x_big, params)
    assert out_big.shape == (300, OUT_DIM)
    assert jnp.allclose(out_big, ref_big, atol=2e-2, rtol=2e-2)

    # bf16 matmul operands (recommended on v6e/v7x); looser tolerance.
    out_bf16 = jax.block_until_ready(
        fitter_forward(x_small, params, matmul_dtype=jnp.bfloat16))
    assert jnp.allclose(out_bf16, ref, atol=5e-2, rtol=5e-2)

    print("KERNEL_OK")
</pallas_src>

<mosaic_0001>
module attributes {stable_mosaic.version = 11 : i64} {
  func.func @_fitter_kernel(%arg0: i32, %arg1: memref<256x5xf32, #tpu.memory_space<vmem>>, %arg2: memref<32x5xf32, #tpu.memory_space<vmem>>, %arg3: memref<32x1xf32, #tpu.memory_space<vmem>>, %arg4: memref<2x32x32xf32, #tpu.memory_space<vmem>>, %arg5: memref<2x32x1xf32, #tpu.memory_space<vmem>>, %arg6: memref<4x32xf32, #tpu.memory_space<vmem>>, %arg7: memref<4x1xf32, #tpu.memory_space<vmem>>, %arg8: memref<4x256xf32, #tpu.memory_space<vmem>>) attributes {dimension_semantics = [#tpu.dimension_semantics<parallel>], iteration_bounds = array<i64: 1>, scalar_prefetch = 0 : i64, scratch_operands = 0 : i64, tpu.core_type = #tpu.core_type<tc>, window_params = [{transform_indices = @transform_0, window_bounds = array<i64: 256, 5>}, {pipeline_mode = #tpu.pipeline_mode<synchronous>, transform_indices = @transform_1, window_bounds = array<i64: 32, 5>}, {pipeline_mode = #tpu.pipeline_mode<synchronous>, transform_indices = @transform_2, window_bounds = array<i64: 32, 1>}, {pipeline_mode = #tpu.pipeline_mode<synchronous>, transform_indices = @transform_3, window_bounds = array<i64: 2, 32, 32>}, {pipeline_mode = #tpu.pipeline_mode<synchronous>, transform_indices = @transform_4, window_bounds = array<i64: 2, 32, 1>}, {pipeline_mode = #tpu.pipeline_mode<synchronous>, transform_indices = @transform_5, window_bounds = array<i64: 4, 32>}, {pipeline_mode = #tpu.pipeline_mode<synchronous>, transform_indices = @transform_6, window_bounds = array<i64: 4, 1>}, {transform_indices = @transform_7, window_bounds = array<i64: 4, 256>}]} {
    %c0 = arith.constant 0 : index
    %c0_0 = arith.constant 0 : index
    %0 = vector.load %arg2[%c0, %c0_0] : memref<32x5xf32, #tpu.memory_space<vmem>>, vector<32x5xf32>
    %c0_1 = arith.constant 0 : index
    %c0_2 = arith.constant 0 : index
    %1 = vector.load %arg1[%c0_1, %c0_2] : memref<256x5xf32, #tpu.memory_space<vmem>>, vector<256x5xf32>
    %cst = arith.constant dense<0.000000e+00> : vector<32x256xf32>
    %2 = tpu.matmul %0, %1, %cst {dimension_numbers = #tpu.dot_dimension_numbers<[1], [1], [0], [0], [0, 0, 1, 0], [], []>} : vector<32x5xf32>, vector<256x5xf32>, vector<32x256xf32> -> vector<32x256xf32>
    %c0_3 = arith.constant 0 : index
    %c0_4 = arith.constant 0 : index
    %3 = vector.load %arg3[%c0_3, %c0_4] : memref<32x1xf32, #tpu.memory_space<vmem>>, vector<32x1xf32>
    %4 = vector.broadcast %3 : vector<32x1xf32> to vector<32x256xf32>
    %5 = arith.addf %2, %4 : vector<32x256xf32>
    %6 = math.tanh %5 : vector<32x256xf32>
    %c0_5 = arith.constant 0 : index
    %c0_6 = arith.constant 0 : index
    %c0_7 = arith.constant 0 : index
    %7 = vector.load %arg4[%c0_5, %c0_6, %c0_7] : memref<2x32x32xf32, #tpu.memory_space<vmem>>, vector<1x32x32xf32>
    %8 = vector.shape_cast %7 : vector<1x32x32xf32> to vector<32x32xf32>
    %c0_8 = arith.constant 0 : index
    %c0_9 = arith.constant 0 : index
    %c0_10 = arith.constant 0 : index
    %9 = vector.load %arg5[%c0_8, %c0_9, %c0_10] : memref<2x32x1xf32, #tpu.memory_space<vmem>>, vector<1x32x1xf32>
    %10 = vector.shape_cast %9 : vector<1x32x1xf32> to vector<32x1xf32>
    %cst_11 = arith.constant dense<0.000000e+00> : vector<32x256xf32>
    %11 = tpu.matmul %8, %6, %cst_11 {dimension_numbers = #tpu.dot_dimension_numbers<[1], [0], [0], [1], [0, 0, 1, 1], [], []>} : vector<32x32xf32>, vector<32x256xf32>, vector<32x256xf32> -> vector<32x256xf32>
    %12 = vector.broadcast %10 : vector<32x1xf32> to vector<32x256xf32>
    %13 = arith.addf %11, %12 : vector<32x256xf32>
    %14 = math.tanh %13 : vector<32x256xf32>
    %c1 = arith.constant 1 : index
    %c0_12 = arith.constant 0 : index
    %c0_13 = arith.constant 0 : index
    %15 = vector.load %arg4[%c1, %c0_12, %c0_13] : memref<2x32x32xf32, #tpu.memory_space<vmem>>, vector<1x32x32xf32>
    %16 = vector.shape_cast %15 : vector<1x32x32xf32> to vector<32x32xf32>
    %c1_14 = arith.constant 1 : index
    %c0_15 = arith.constant 0 : index
    %c0_16 = arith.constant 0 : index
    %17 = vector.load %arg5[%c1_14, %c0_15, %c0_16] : memref<2x32x1xf32, #tpu.memory_space<vmem>>, vector<1x32x1xf32>
    %18 = vector.shape_cast %17 : vector<1x32x1xf32> to vector<32x1xf32>
    %cst_17 = arith.constant dense<0.000000e+00> : vector<32x256xf32>
    %19 = tpu.matmul %16, %14, %cst_17 {dimension_numbers = #tpu.dot_dimension_numbers<[1], [0], [0], [1], [0, 0, 1, 1], [], []>} : vector<32x32xf32>, vector<32x256xf32>, vector<32x256xf32> -> vector<32x256xf32>
    %20 = vector.broadcast %18 : vector<32x1xf32> to vector<32x256xf32>
    %21 = arith.addf %19, %20 : vector<32x256xf32>
    %22 = math.tanh %21 : vector<32x256xf32>
    %c0_18 = arith.constant 0 : index
    %c0_19 = arith.constant 0 : index
    %23 = vector.load %arg6[%c0_18, %c0_19] : memref<4x32xf32, #tpu.memory_space<vmem>>, vector<4x32xf32>
    %cst_20 = arith.constant dense<0.000000e+00> : vector<4x256xf32>
    %24 = tpu.matmul %23, %22, %cst_20 {dimension_numbers = #tpu.dot_dimension_numbers<[1], [0], [0], [1], [0, 0, 1, 1], [], []>} : vector<4x32xf32>, vector<32x256xf32>, vector<4x256xf32> -> vector<4x256xf32>
    %c0_21 = arith.constant 0 : index
    %c0_22 = arith.constant 0 : index
    %25 = vector.load %arg7[%c0_21, %c0_22] : memref<4x1xf32, #tpu.memory_space<vmem>>, vector<4x1xf32>
    %26 = vector.broadcast %25 : vector<4x1xf32> to vector<4x256xf32>
    %27 = arith.addf %24, %26 : vector<4x256xf32>
    %c0_23 = arith.constant 0 : index
    %c0_24 = arith.constant 0 : index
    %28 = vector.load %arg8[%c0_23, %c0_24] : memref<4x256xf32, #tpu.memory_space<vmem>>, vector<4x256xf32>
    tpu.vector_store %arg8[%c0_23, %c0_24], %27 {strides = array<i32>} : memref<4x256xf32, #tpu.memory_space<vmem>>, vector<4x256xf32>,
    return
  }
  func.func @transform_0(%arg0: i32) -> (i32, i32) {
    %c0_i32 = arith.constant 0 : i32
    %c0_i32_0 = arith.constant 0 : i32
    return %arg0, %c0_i32 : i32, i32
  }
  func.func @transform_1(%arg0: i32) -> (i32, i32) {
    %c0_i32 = arith.constant 0 : i32
    %c0_i32_0 = arith.constant 0 : i32
    %c0_i32_1 = arith.constant 0 : i32
    return %c0_i32, %c0_i32_0 : i32, i32
  }
  func.func @transform_2(%arg0: i32) -> (i32, i32) {
    %c0_i32 = arith.constant 0 : i32
    %c0_i32_0 = arith.constant 0 : i32
    %c0_i32_1 = arith.constant 0 : i32
    return %c0_i32, %c0_i32_0 : i32, i32
  }
  func.func @transform_3(%arg0: i32) -> (i32, i32, i32) {
    %c0_i32 = arith.constant 0 : i32
    %c0_i32_0 = arith.constant 0 : i32
    %c0_i32_1 = arith.constant 0 : i32
    %c0_i32_2 = arith.constant 0 : i32
    return %c0_i32, %c0_i32_0, %c0_i32_1 : i32, i32, i32
  }
  func.func @transform_4(%arg0: i32) -> (i32, i32, i32) {
    %c0_i32 = arith.constant 0 : i32
    %c0_i32_0 = arith.constant 0 : i32
    %c0_i32_1 = arith.constant 0 : i32
    %c0_i32_2 = arith.constant 0 : i32
    return %c0_i32, %c0_i32_0, %c0_i32_1 : i32, i32, i32
  }
  func.func @transform_5(%arg0: i32) -> (i32, i32) {
    %c0_i32 = arith.constant 0 : i32
    %c0_i32_0 = arith.constant 0 : i32
    %c0_i32_1 = arith.constant 0 : i32
    return %c0_i32, %c0_i32_0 : i32, i32
  }
  func.func @transform_6(%arg0: i32) -> (i32, i32) {
    %c0_i32 = arith.constant 0 : i32
    %c0_i32_0 = arith.constant 0 : i32
    %c0_i32_1 = arith.constant 0 : i32
    return %c0_i32, %c0_i32_0 : i32, i32
  }
  func.func @transform_7(%arg0: i32) -> (i32, i32) {
    %c0_i32 = arith.constant 0 : i32
    %c0_i32_0 = arith.constant 0 : i32
    return %c0_i32, %arg0 : i32, i32
  }
}

</mosaic_0001>

<bundles_post_ra>
// kernel: tpu_custom_call.1
= control target key start
LH: loop header
LB: loop body
LE: loop exit
PB: predicated region body
PF: predicated region fallthrough
CT: control target
= control target key end

     0   :  { %vm87_vm0 = vcmask 39936   ;;  %v912_v7 = vmov 0   ;;  %s1209_s0 = inlined_call_operand.vmem [shape: f32[256,5], index: 0, kind: input, shape index: {}]   ;;  %s1210_s1 = inlined_call_operand.vmem [shape: f32[32,5], index: 1, kind: input, shape index: {}]   ;;  %s1211_s2 = inlined_call_operand.vmem [shape: f32[32,1], index: 2, kind: input, shape index: {}]   ;;  %s1212_s3 = inlined_call_operand.vmem [shape: f32[2,32,32], index: 3, kind: input, shape index: {}]   ;;  %s1213_s4 = inlined_call_operand.vmem [shape: f32[2,32,1], index: 4, kind: input, shape index: {}]   ;;  %s1214_s5 = inlined_call_operand.vmem [shape: f32[4,32], index: 5, kind: input, shape index: {}]   ;;  %s1215_s6 = inlined_call_operand.vmem [shape: f32[4,1], index: 6, kind: input, shape index: {}]   ;;  %s1216_s7 = inlined_call_operand.hbm [shape: f32[4,256], index: 7, kind: output, shape index: {}]  }
   0x1   :  { %v47_v0 = vld [vmem:[%s1209_s0 + $0x80] sm:$0xff]  ;;  %v48_v1 = vld [vmem:[%s1209_s0 + $0x88] sm:$0xff]  ;;  %vm966_vm1 = vmpackc.low %vm87_vm0, %vm87_vm0  ;;  %838 = vset.pattern.permute.xlu0 %v912_v7  ;;  %839 = vset.pattern.permute.xlu1 %v912_v7 }
   0x2   :  { %v31_v2 = vld [vmem:[%s1209_s0] sm:$0xff]  ;;  %v763_v3 = vpack.c.bf16 %v48_v1, %v47_v0  ;;  %v32_v5 = vld [vmem:[%s1209_s0 + $0x8] sm:$0xff]  ;;  %v49_v6 = vld [vmem:[%s1209_s0 + $0x90] sm:$0xff] }
   0x3   :  { %v766_v8 = vpack.c.bf16 %v32_v5, %v31_v2  ;;  %v50_v9 = vld [vmem:[%s1209_s0 + $0x98] sm:$0xff]  ;;  %v33_v11 = vld [vmem:[%s1209_s0 + $0x10] sm:$0xff]  ;;  %v51_v13 = vld [vmem:[%s1209_s0 + $0xa0] sm:$0xff] }
   0x4   :  { %765 = vmatprep.subr.msk.bf16.mxu0 %vm966_vm1, %v763_v3  ;;  %v769_v10 = vpack.c.bf16 %v50_v9, %v49_v6  ;;  %v34_v12 = vld [vmem:[%s1209_s0 + $0x18] sm:$0xff]  ;;  %v52_v14 = vld [vmem:[%s1209_s0 + $0xa8] sm:$0xff]  ;;  %v1000_v17 = vld [vmem:[%s1210_s1] sm:$0xff] }
   0x5   :  { %768 = vmatpush3.bf16.xpose.msk.msra.mxu0 %vm966_vm1, %v766_v8  ;;  %v772_v15 = vpack.c.bf16 %v34_v12, %v33_v11  ;;  %v775_v16 = vpack.c.bf16 %v52_v14, %v51_v13  ;;  %755 = vmatprep.mubr.msk.f32.mxu0 %vm87_vm0, %v1000_v17  ;;  %v63_v18 = vld [vmem:[%s1211_s2] sm:$0xff]  ;;  %v36_v20 = vld [vmem:[%s1209_s0 + $0x28] sm:$0xff]  ;;  %v65_v21 = vld [vmem:[%s1211_s2 + $0x10] sm:$0xff] }
   0x6   :  { %771 = vmatprep.subr.msk.bf16.mxu0 %vm966_vm1, %v769_v10  ;;  %v35_v19 = vld [vmem:[%s1209_s0 + $0x20] sm:$0xff]  ;;  %69 = vperm.xlu0 %838, %v63_v18   ;;  %v53_v22 = vld [vmem:[%s1209_s0 + $0xb0] sm:$0xff]  ;;  %v54_v23 = vld [vmem:[%s1209_s0 + $0xb8] sm:$0xff] }
   0x7   :  { %v64_v24 = vld [vmem:[%s1211_s2 + $0x8] sm:$0xff]  ;;  %79 = vperm.xlu1 %839, %v65_v21   ;;  %v66_v25 = vld [vmem:[%s1211_s2 + $0x18] sm:$0xff]  ;;  %v778_v26 = vpack.c.bf16 %v36_v20, %v35_v19 }
   0xd   :  { %774 = vmatpush3.bf16.xpose.msk.msra.mxu0 %vm966_vm1, %v772_v15 }
   0xe   :  { %777 = vmatprep.subr.msk.bf16.mxu0 %vm966_vm1, %v775_v16 }
   0xf   :  { %12 = vsyncpa [#allocation3], 0  ;;  %v781_v27 = vpack.c.bf16 %v54_v23, %v53_v22  ;;  %74 = vperm.xlu0 %838, %v64_v24   ;;  %v297_v28 = vld [vmem:[%s1213_s4] sm:$0xff]  ;;  %84 = vperm.xlu1 %839, %v66_v25   ;;  %v298_v29 = vld [vmem:[%s1213_s4 + $0x8] sm:$0xff]  ;;  %v913_v3 = vmov 0.0   ;;  %vm321_vm2 = vcmask 261120  }
  0x10   :  { %v37_v30 = vld [vmem:[%s1209_s0 + $0x30] sm:$0xff]  ;;  %v38_v31 = vld [vmem:[%s1209_s0 + $0x38] sm:$0xff]  ;;  %v55_v32 = vld [vmem:[%s1209_s0 + $0xc0] sm:$0xff]  ;;  %398 = vmatprep.mubr.f32.mxu1 %v913_v3  ;;  %s914_s15 = smov [#allocation2]  }
  0x11   :  { %v56_v33 = vld [vmem:[%s1209_s0 + $0xc8] sm:$0xff]  ;;  %v299_v34 = vld [vmem:[%s1213_s4 + $0x10] sm:$0xff]  ;;  %v300_v35 = vld [vmem:[%s1213_s4 + $0x18] sm:$0xff]  ;;  %v784_v36 = vpack.c.bf16 %v38_v31, %v37_v30  ;;  %s662_s16 = sshll.u32 %s914_s15, 4  ;;  %s663_s16 = int_to_ptr.vmem [resolvable:$true] %s662_s16 }
  0x12   :  { %v787_v37 = vpack.c.bf16 %v56_v33, %v55_v32  ;;  %v714_v38 = vld [vmem:[%s1213_s4 + $0x20] sm:$0xff]  ;;  %v715_v39 = vld [vmem:[%s1213_s4 + $0x28] sm:$0xff]  ;;  %v57_v42 = vld [vmem:[%s1209_s0 + $0xd0] sm:$0xff]  ;;  %s888_s17 = scalar_lea.vmem %s663_s16, 128  ;;  %p893_p1 = scmp.lt.s32.totalorder %s663_s16, %s663_s16 }
  0x13   :  { %303 = vperm.xlu0 %838, %v297_v28   ;;  %308 = vperm.xlu1 %839, %v298_v29   ;;  %v39_v40 = vld [vmem:[%s1209_s0 + $0x40] sm:$0xff]  ;;  %v40_v41 = vld [vmem:[%s1209_s0 + $0x48] sm:$0xff]  ;;  %v58_v43 = vld [vmem:[%s1209_s0 + $0xd8] sm:$0xff]  ;;  %p889_p0 = scmp.ne.s32.totalorder %s663_s16, %s888_s17  ;;  %p894_p2 = scmp.lt.s32.totalorder %s888_s17, %s888_s17 }
  0x14   :  { %v716_v44 = vld [vmem:[%s1213_s4 + $0x30] sm:$0xff]  ;;  %v717_v45 = vld [vmem:[%s1213_s4 + $0x38] sm:$0xff]  ;;  %v790_v46 = vpack.c.bf16 %v40_v41, %v39_v40  ;;  %v793_v47 = vpack.c.bf16 %v58_v43, %v57_v42  ;;  %v571_v48 = vld [vmem:[%s1215_s6] sm:$0xf] }
  0x15   :  { %780 = vmatpush3.bf16.xpose.msk.msra.mxu0 %vm966_vm1, %v778_v26  ;;  %v41_v49 = vld [vmem:[%s1209_s0 + $0x50] sm:$0xff]  ;;  %v42_v50 = vld [vmem:[%s1209_s0 + $0x58] sm:$0xff]  ;;  %v59_v51 = vld [vmem:[%s1209_s0 + $0xe0] sm:$0xff]  ;;  %p895_p3 = por %p894_p2, %p893_p1 }
  0x16   :  { %783 = vmatprep.subr.msk.bf16.mxu0 %vm966_vm1, %v781_v27  ;;  %v60_v52 = vld [vmem:[%s1209_s0 + $0xe8] sm:$0xff]  ;;  %v796_v53 = vpack.c.bf16 %v42_v50, %v41_v49  ;;  %v43_v55 = vld [vmem:[%s1209_s0 + $0x60] sm:$0xff]  ;;  %v61_v57 = vld [vmem:[%s1209_s0 + $0xf0] sm:$0xff] }
  0x17   :  { %313 = vperm.xlu0 %838, %v299_v34   ;;  %318 = vperm.xlu1 %839, %v300_v35   ;;  %v799_v54 = vpack.c.bf16 %v60_v52, %v59_v51  ;;  %v44_v56 = vld [vmem:[%s1209_s0 + $0x68] sm:$0xff]  ;;  %v62_v58 = vld [vmem:[%s1209_s0 + $0xf8] sm:$0xff]  ;;  %v45_v61 = vld [vmem:[%s1209_s0 + $0x70] sm:$0xff]  ;;  %p896_p4 = pnand %p895_p3, %p889_p0 }
  0x18   :  { %v802_v59 = vpack.c.bf16 %v44_v56, %v43_v55  ;;  %v805_v60 = vpack.c.bf16 %v62_v58, %v61_v57  ;;  %v46_v62 = vld [vmem:[%s1209_s0 + $0x78] sm:$0xff]  ;;  %v28_v0 = vld [vmem:[%s1210_s1 + $0x8] sm:$0xff]  ;;  %v29_v1 = vld [vmem:[%s1210_s1 + $0x10] sm:$0xff] }
  0x19   :  { %v808_v63 = vpack.c.bf16 %v46_v62, %v45_v61  ;;  %v30_v2 = vld [vmem:[%s1210_s1 + $0x18] sm:$0xff] }
  0x1b   :  { %443 = vperm.xlu0 %838, %v714_v38   ;;  %448 = vperm.xlu1 %839, %v715_v39   ;;  %v295_v38 = vld [vmem:[%s1212_s3 + $0x10] sm:$0xff]  ;;  %v296_v39 = vld [vmem:[%s1212_s3 + $0x18] sm:$0xff] }
  0x1d   :  { %786 = vmatpush3.bf16.xpose.msk.msra.mxu0 %vm966_vm1, %v784_v36  ;;  %v293_v36 = vld [vmem:[%s1212_s3] sm:$0xff] }
  0x1e   :  { %789 = vmatprep.subr.msk.bf16.mxu0 %vm966_vm1, %v787_v37  ;;  %v294_v37 = vld [vmem:[%s1212_s3 + $0x8] sm:$0xff] }
  0x1f   :  { %453 = vperm.xlu0 %838, %v716_v44   ;;  %458 = vperm.xlu1 %839, %v717_v45  }
  0x23   :  { %574 = vperm.xlu0 %838, %v571_v48  }
  0x25   :  { %792 = vmatpush3.bf16.xpose.msk.msra.mxu0 %vm966_vm1, %v790_v46 }
  0x26   :  { %795 = vmatprep.subr.msk.bf16.mxu0 %vm966_vm1, %v793_v47 }
  0x2d   :  { %798 = vmatpush3.bf16.xpose.msk.msra.mxu0 %vm966_vm1, %v796_v53 }
  0x2e   :  { %801 = vmatprep.subr.msk.bf16.mxu0 %vm966_vm1, %v799_v54 }
  0x35   :  { %804 = vmatpush3.bf16.xpose.msk.msra.mxu0 %vm966_vm1, %v802_v59 }
  0x36   :  { %807 = vmatprep.subr.msk.bf16.mxu0 %vm966_vm1, %v805_v60 }
  0x3d   :  { %810 = vmatpush3.bf16.xpose.msk.msra.mxu0 %vm966_vm1, %v808_v63 }
  0x44   :  { %756 = vmatmul.mubr.msk.f32.vlgmr.msra.gmra.mrb[0].mxu0 %vm87_vm0, %v1000_v17 }
  0x45   :  { %757 = vmatprep.mubr.msk.f32.mxu0 %vm87_vm0, %v28_v0 }
  0x48   :  { %758 = vmatmul.mubr.msk.f32.gmra.mrb[2].mxu0 %vm87_vm0, %v28_v0 }
  0x49   :  { %759 = vmatprep.mubr.msk.f32.mxu0 %vm87_vm0, %v29_v1 }
  0x4c   :  { %760 = vmatmul.mubr.msk.f32.gmra.mrb[4].mxu0 %vm87_vm0, %v29_v1 }
  0x4d   :  { %761 = vmatprep.mubr.msk.f32.mxu0 %vm87_vm0, %v30_v2 }
  0x50   :  { %762 = vmatmul.mubr.msk.f32.gmra.mrb[6].mxu0 %vm87_vm0, %v30_v2 }
  0x85   :  { %v70_v4 = vpop.permute.xlu0 %69 }
  0x86   :  { %v80_v13 = vpop.permute.xlu1 %79 }
  0x8e   :  { %v75_v9 = vpop.permute.xlu0 %74  ;;  %v85_v19 = vpop.permute.xlu1 %84 }
  0x92   :  { %v304_v40 = vpop.permute.xlu0 %303  ;;  %v309_v45 = vpop.permute.xlu1 %308 }
  0x96   :  { %v314_v50 = vpop.permute.xlu0 %313  ;;  %v319_v55 = vpop.permute.xlu1 %318 }
 0x117   :  { %v262_v5 = vpop.f32.mrb[0].mxu0 }
 0x118   :  { %v263_v6 = vadd.f32 %v262_v5, %v70_v4  ;;  %v264_v7 = vpop.f32.mrb[1].mxu0 }
 0x119   :  { %v265_v8 = vadd.f32 %v264_v7, %v70_v4 }
 0x11a   :  { %840 = vtanh.f32 %v263_v6 }
 0x11b   :  { %v268_v10 = vpop.f32.mrb[2].mxu0  ;;  %842 = vtanh.f32 %v265_v8 }
 0x11c   :  { %v269_v11 = vadd.f32 %v268_v10, %v75_v9  ;;  %v270_v12 = vpop.f32.mrb[3].mxu0  ;;  %v711_v10 = vld [vmem:[%s1212_s3 + $0x28] sm:$0xff] }
 0x11d   :  { %v271_v14 = vadd.f32 %v270_v12, %v75_v9  ;;  %v710_v9 = vld [vmem:[%s1212_s3 + $0x20] sm:$0xff]  ;;  %v713_v12 = vld [vmem:[%s1212_s3 + $0x38] sm:$0xff] }
 0x11e   :  { %844 = vtanh.f32 %v269_v11  ;;  %v712_v11 = vld [vmem:[%s1212_s3 + $0x30] sm:$0xff] }
 0x11f   :  { %846 = vtanh.f32 %v271_v14  ;;  %v274_v15 = vpop.f32.mrb[4].mxu0 }
 0x120   :  { %v275_v16 = vadd.f32 %v274_v15, %v80_v13  ;;  %v276_v17 = vpop.f32.mrb[5].mxu0 }
 0x121   :  { %v277_v18 = vadd.f32 %v276_v17, %v80_v13  ;;  %v444_v13 = vpop.permute.xlu0 %443 }
 0x122   :  { %848 = vtanh.f32 %v275_v16 }
 0x123   :  { %v280_v20 = vpop.f32.mrb[6].mxu0  ;;  %850 = vtanh.f32 %v277_v18  ;;  %v449_v18 = vpop.permute.xlu1 %448 }
 0x124   :  { %v281_v21 = vadd.f32 %v280_v20, %v85_v19  ;;  %v282_v22 = vpop.f32.mrb[7].mxu0  ;;  %v841_v24 = vpop.eup %840 }
 0x125   :  { %v283_v23 = vadd.f32 %v282_v22, %v85_v19  ;;  %v843_v25 = vpop.eup %842 }
 0x126   :  { %852 = vtanh.f32 %v281_v21 }
 0x127   :  { %854 = vtanh.f32 %v283_v23  ;;  %v454_v23 = vpop.permute.xlu0 %453 }
 0x128   :  { %v845_v26 = vpop.eup %844 }
 0x129   :  { %v847_v27 = vpop.eup %846  ;;  %v813_v28 = vpack.c.bf16 %v845_v26, %v841_v24 }
 0x12a   :  { %v811_v29 = vpack.c.bf16 %v847_v27, %v843_v25 }
 0x12c   :  { %812 = vmatprep.subr.bf16.mxu1 %v811_v29  ;;  %v849_v30 = vpop.eup %848 }
 0x12d   :  { %814 = vmatpush1.bf16.msra.mxu1 %v813_v28  ;;  %v851_v31 = vpop.eup %850 }
 0x130   :  { %v853_v32 = vpop.eup %852 }
 0x131   :  { %v855_v33 = vpop.eup %854  ;;  %v817_v34 = vpack.c.bf16 %v853_v32, %v849_v30 }
 0x132   :  { %v815_v35 = vpack.c.bf16 %v855_v33, %v851_v31 }
 0x134   :  { %816 = vmatprep.subr.bf16.mxu1 %v815_v35 }
 0x135   :  { %818 = vmatpush1.bf16.msra.mxu1 %v817_v34 }
 0x138   :  { %706 = vmatmul.mubr.msk.f32.vlgmr.msra.gmra.mrb[0].mxu1 %vm321_vm2, %v293_v36 }
 0x139   :  { %404 = vmatprep.mubr.f32.mxu1 %v913_v3 }
 0x13c   :  { %707 = vmatmul.mubr.msk.f32.gmra.mrb[2].mxu1 %vm321_vm2, %v294_v37 }
 0x13d   :  { %410 = vmatprep.mubr.f32.mxu1 %v913_v3 }
 0x140   :  { %708 = vmatmul.mubr.msk.f32.gmra.mrb[4].mxu1 %vm321_vm2, %v295_v38 }
 0x141   :  { %416 = vmatprep.mubr.f32.mxu1 %v913_v3 }
 0x144   :  { %709 = vmatmul.mubr.msk.f32.gmra.mrb[6].mxu1 %vm321_vm2, %v296_v39 }
 0x145   :  { %537 = vmatprep.mubr.f32.mxu1 %v913_v3 }
 0x20b   :  { %v400_v41 = vpop.f32.mrb[0].mxu1 }
 0x20c   :  { %v401_v42 = vadd.f32 %v400_v41, %v304_v40  ;;  %v402_v43 = vpop.f32.mrb[1].mxu1 }
 0x20d   :  { %v403_v44 = vadd.f32 %v402_v43, %v304_v40 }
 0x20e   :  { %856 = vtanh.f32 %v401_v42 }
 0x20f   :  { %v406_v46 = vpop.f32.mrb[2].mxu1  ;;  %858 = vtanh.f32 %v403_v44  ;;  %v570_v44 = vld [vmem:[%s1214_s5] sm:$0xf] }
 0x210   :  { %v407_v47 = vadd.f32 %v406_v46, %v309_v45  ;;  %v408_v48 = vpop.f32.mrb[3].mxu1 }
 0x211   :  { %v409_v49 = vadd.f32 %v408_v48, %v309_v45  ;;  %v575_v45 = vpop.permute.xlu0 %574 }
 0x212   :  { %860 = vtanh.f32 %v407_v47 }
 0x213   :  { %862 = vtanh.f32 %v409_v49  ;;  %v412_v51 = vpop.f32.mrb[4].mxu1 }
 0x214   :  { %v413_v52 = vadd.f32 %v412_v51, %v314_v50  ;;  %v414_v53 = vpop.f32.mrb[5].mxu1 }
 0x215   :  { %v415_v54 = vadd.f32 %v414_v53, %v314_v50 }
 0x216   :  { %864 = vtanh.f32 %v413_v52 }
 0x217   :  { %v418_v56 = vpop.f32.mrb[6].mxu1  ;;  %866 = vtanh.f32 %v415_v54 }
 0x218   :  { %v419_v57 = vadd.f32 %v418_v56, %v319_v55  ;;  %v420_v58 = vpop.f32.mrb[7].mxu1  ;;  %v857_v60 = vpop.eup %856 }
 0x219   :  { %v421_v59 = vadd.f32 %v420_v58, %v319_v55  ;;  %v859_v61 = vpop.eup %858 }
 0x21a   :  { %868 = vtanh.f32 %v419_v57 }
 0x21b   :  { %870 = vtanh.f32 %v421_v59 }
 0x21c   :  { %v861_v62 = vpop.eup %860 }
 0x21d   :  { %v863_v63 = vpop.eup %862  ;;  %v821_v0 = vpack.c.bf16 %v861_v62, %v857_v60 }
 0x21e   :  { %v819_v1 = vpack.c.bf16 %v863_v63, %v859_v61 }
 0x220   :  { %820 = vmatprep.subr.bf16.mxu1 %v819_v1  ;;  %v865_v2 = vpop.eup %864 }
 0x221   :  { %822 = vmatpush1.bf16.msra.mxu1 %v821_v0  ;;  %v867_v4 = vpop.eup %866 }
 0x224   :  { %v869_v5 = vpop.eup %868 }
 0x225   :  { %v871_v6 = vpop.eup %870  ;;  %v825_v7 = vpack.c.bf16 %v869_v5, %v865_v2 }
 0x226   :  { %v823_v8 = vpack.c.bf16 %v871_v6, %v867_v4 }
 0x228   :  { %824 = vmatprep.subr.bf16.mxu1 %v823_v8 }
 0x229   :  { %826 = vmatpush1.bf16.msra.mxu1 %v825_v7 }
 0x22c   :  { %718 = vmatmul.mubr.msk.f32.vlgmr.msra.gmra.mrb[8].mxu1 %vm321_vm2, %v710_v9 }
 0x22d   :  { %543 = vmatprep.mubr.f32.mxu1 %v913_v3 }
 0x230   :  { %719 = vmatmul.mubr.msk.f32.gmra.mrb[10].mxu1 %vm321_vm2, %v711_v10 }
 0x231   :  { %549 = vmatprep.mubr.f32.mxu1 %v913_v3 }
 0x234   :  { %720 = vmatmul.mubr.msk.f32.gmra.mrb[12].mxu1 %vm321_vm2, %v712_v11 }
 0x235   :  { %555 = vmatprep.mubr.f32.mxu1 %v913_v3 }
 0x238   :  { %721 = vmatmul.mubr.msk.f32.gmra.mrb[14].mxu1 %vm321_vm2, %v713_v12 }
 0x239   :  { %644 = vmatprep.mubr.f32.mxu1 %v913_v3  ;;  %v459_v3 = vpop.permute.xlu1 %458 }
 0x2ff   :  { %v539_v14 = vpop.f32.mrb[8].mxu1 }
 0x300   :  { %v540_v15 = vadd.f32 %v539_v14, %v444_v13  ;;  %v541_v16 = vpop.f32.mrb[9].mxu1 }
 0x301   :  { %v542_v17 = vadd.f32 %v541_v16, %v444_v13 }
 0x302   :  { %872 = vtanh.f32 %v540_v15 }
 0x303   :  { %v545_v19 = vpop.f32.mrb[10].mxu1  ;;  %874 = vtanh.f32 %v542_v17 }
 0x304   :  { %v546_v20 = vadd.f32 %v545_v19, %v449_v18  ;;  %v547_v21 = vpop.f32.mrb[11].mxu1 }
 0x305   :  { %v548_v22 = vadd.f32 %v547_v21, %v449_v18 }
 0x306   :  { %876 = vtanh.f32 %v546_v20 }
 0x307   :  { %878 = vtanh.f32 %v548_v22  ;;  %v551_v24 = vpop.f32.mrb[12].mxu1 }
 0x308   :  { %v552_v25 = vadd.f32 %v551_v24, %v454_v23  ;;  %v553_v26 = vpop.f32.mrb[13].mxu1 }
 0x309   :  { %v554_v27 = vadd.f32 %v553_v26, %v454_v23 }
 0x30a   :  { %880 = vtanh.f32 %v552_v25 }
 0x30b   :  { %v557_v28 = vpop.f32.mrb[14].mxu1  ;;  %882 = vtanh.f32 %v554_v27 }
 0x30c   :  { %v558_v29 = vadd.f32 %v557_v28, %v459_v3  ;;  %v559_v30 = vpop.f32.mrb[15].mxu1  ;;  %v873_v32 = vpop.eup %872 }
 0x30d   :  { %v560_v31 = vadd.f32 %v559_v30, %v459_v3  ;;  %v875_v33 = vpop.eup %874 }
 0x30e   :  { %884 = vtanh.f32 %v558_v29 }
 0x30f   :  { %886 = vtanh.f32 %v560_v31 }
 0x310   :  { %v877_v34 = vpop.eup %876 }
 0x311   :  { %v879_v35 = vpop.eup %878  ;;  %v829_v36 = vpack.c.bf16 %v877_v34, %v873_v32 }
 0x312   :  { %v827_v37 = vpack.c.bf16 %v879_v35, %v875_v33 }
 0x314   :  { %828 = vmatprep.subr.bf16.mxu1 %v827_v37  ;;  %v881_v38 = vpop.eup %880 }
 0x315   :  { %830 = vmatpush1.bf16.msra.mxu1 %v829_v36  ;;  %v883_v39 = vpop.eup %882 }
 0x318   :  { %v885_v40 = vpop.eup %884 }
 0x319   :  { %v887_v41 = vpop.eup %886  ;;  %v833_v42 = vpack.c.bf16 %v885_v40, %v881_v38 }
 0x31a   :  { %v831_v43 = vpack.c.bf16 %v887_v41, %v883_v39 }
 0x31c   :  { %832 = vmatprep.subr.bf16.mxu1 %v831_v43 }
 0x31d   :  { %834 = vmatpush1.bf16.msra.mxu1 %v833_v42 }
 0x320   :  { %722 = vmatmul.mubr.msk.f32.vlgmr.msra.gmra.mrb[16].mxu1 %vm321_vm2, %v570_v44 }
 0x3f3   :  { %v646_v46 = vpop.f32.mrb[16].mxu1 }
 0x3f4   :  { %v647_v47 = vadd.f32 %v646_v46, %v575_v45  ;;  %v648_v48 = vpop.f32.mrb[17].mxu1 }
 0x3f5   :  { %v649_v49 = vadd.f32 %v648_v48, %v575_v45 }
 0x3f7   :  { %v653_v50 = vcombine.low %v647_v47, %v649_v49 }
 0x3f9   :  { %655 = vst [vmem:[#allocation2] sm:$0xff] %v653_v50 }
 0x3fa   :  { %899 = shalt.err (!%p896_p4)
}
 0x3fb   :  { %s900_s19 = scalar_lea.hbm %s1216_s7, 128 }
 0x3fc   :  { %p901_p5 = scmp.ne.s32.totalorder %s1216_s7, %s900_s19  ;;  %p904_p6 = scmp.lt.u32.totalorder %s900_s19, %s1216_s7 }
 0x3fe   :  { %p906_p7 = pnand %p904_p6, %p901_p5 }
 0x400   :  { %909 = shalt.err (!%p906_p7)
}
 0x401   :  { %665 = dma.vmem_to_hbm [thread:$0]  %s663_s16, 128, %s1216_s7, [#allocation3]  }
 0x402   :  { %910 = dma.done.wait [#allocation3], 128  }
 0x403   :  { %911 = vsyncadd [#allocation3], 4294967168 }
 0x404   :  { %669 = vsyncpa [#allocation3], 1 }

</bundles_post_ra>
